<compile_context>
chip_gen: v7x
topology: tpu7x:2x2x1
jax: 0.10.0
libtpu: 0.0.40
codegen_flags: <defaults>
</compile_context>

<pallas_src>
import functools

import jax
import jax.numpy as jnp
from jax.experimental import pallas as pl
from jax.experimental.pallas import tpu as pltpu

Z_DIM = 64
HIDDEN = 256
IMG_DIM = 784  # 28*28, typical MNIST GAN output
NEG_SLOPE = 0.1

_DEFAULT_TB = 512  # target batch tile (rows per grid step); sweep 512-1024 for big batches


def _round_up(x: int, m: int) -> int:
    return pl.cdiv(x, m) * m


def _choose_batch_tiling(batch: int, block_b: int) -> tuple[int, int]:
    """Pick (tile_rows, padded_batch) with minimal padding waste.

    - rounds the batch up to the 8-row sublane granule only,
    - forces >= 2 grid steps when the batch allows it (so the "parallel" batch
      axis shards across both v7x TensorCores),
    - balances tile sizes so the padded remainder is < 8 rows per tile instead
      of up-to-(tile-1) rows.
    """
    b8 = _round_up(max(batch, 1), 8)
    min_tiles = 2 if b8 >= 16 else 1
    num_tiles = max(min_tiles, pl.cdiv(b8, block_b))
    tb = _round_up(pl.cdiv(b8, num_tiles), 8)
    b_pad = tb * num_tiles
    return tb, b_pad


def generator_kernel(x_ref, w1_ref, b1_ref, w2_ref, b2_ref, o_ref):
    # fc1: (TB, Z) @ (Z, H) -> f32 accumulate on the MXU
    h = jnp.dot(x_ref[...], w1_ref[...], preferred_element_type=jnp.float32)
    h = h + b1_ref[...]
    # LeakyReLU(negative_slope=0.1) in f32 on the VPU
    h = jnp.where(h > 0, h, NEG_SLOPE * h)
    # fc2: cast activations back to the MXU compute dtype, f32 accumulate
    y = jnp.dot(h.astype(w2_ref.dtype), w2_ref[...],
                preferred_element_type=jnp.float32)
    y = y + b2_ref[...]
    # Tanh on the EUP in f32; store at the output dtype (bf16 by default to
    # halve the dominant writeback stream).
    o_ref[...] = jnp.tanh(y).astype(o_ref.dtype)


def prepare_params(w1, b1, w2, b2):
    """One-time cast of parameters to the kernel's preferred dtypes."""
    return (w1.astype(jnp.bfloat16), b1.astype(jnp.float32),
            w2.astype(jnp.bfloat16), b2.astype(jnp.float32))


@functools.partial(jax.jit, static_argnames=("block_b", "out_dtype"))
def generator_forward(x, w1, b1, w2, b2, *, block_b=_DEFAULT_TB,
                      out_dtype=jnp.bfloat16):
    """x: (B, z_dim); w1: (z_dim, H); b1: (1, H); w2: (H, img_dim); b2: (1, img_dim).

    Returns (B, img_dim) in `out_dtype` (bf16 by default; tanh output is in
    [-1, 1] so bf16 is numerically fine and halves HBM writeback).
    """
    compute_dtype = jnp.bfloat16

    B, Z = x.shape
    H, N = w2.shape

    # --- remainder-aware batch tiling ---------------------------------------
    tb, b_pad = _choose_batch_tiling(B, block_b)
    if b_pad != B:
        x = jnp.pad(x, ((0, b_pad - B), (0, 0)))

    # --- cast matmul operands to bf16 (f32 accumulation in-kernel) ----------
    # No-ops under jit if the params were already prepared via prepare_params().
    x_c = x.astype(compute_dtype)
    w1_c = w1.astype(compute_dtype)
    w2_c = w2.astype(compute_dtype)
    b1_f = b1.astype(jnp.float32)
    b2_f = b2.astype(jnp.float32)

    grid = (b_pad // tb,)

    out_itemsize = jnp.dtype(out_dtype).itemsize
    flops = 2 * b_pad * (Z * H + H * N)
    transcendentals = b_pad * N  # tanh
    bytes_accessed = (x_c.size * 2 + w1_c.size * 2 + w2_c.size * 2
                      + b1_f.size * 4 + b2_f.size * 4
                      + b_pad * N * out_itemsize)

    out = pl.pallas_call(
        generator_kernel,
        out_shape=jax.ShapeDtypeStruct((b_pad, N), out_dtype),
        grid=grid,
        in_specs=[
            pl.BlockSpec((tb, Z), lambda i: (i, 0)),   # x tile, streamed per step
            pl.BlockSpec((Z, H), lambda i: (0, 0)),    # W1 resident
            pl.BlockSpec((1, H), lambda i: (0, 0)),    # b1 resident
            pl.BlockSpec((H, N), lambda i: (0, 0)),    # W2 resident (full width)
            pl.BlockSpec((1, N), lambda i: (0, 0)),    # b2 resident
        ],
        out_specs=pl.BlockSpec((tb, N), lambda i: (i, 0)),  # unpadded width
        compiler_params=pltpu.CompilerParams(
            dimension_semantics=("parallel",),
        ),
        cost_estimate=pl.CostEstimate(
            flops=flops,
            transcendentals=transcendentals,
            bytes_accessed=bytes_accessed,
        ),
    )(x_c, w1_c, b1_f, w2_c, b2_f)

    # Only the (small, <8*num_tiles rows) batch padding needs slicing off; no
    # feature-column slice anymore.
    if b_pad != B:
        out = out[:B]
    return out


def init_params(key, z_dim=Z_DIM, hidden=HIDDEN, img_dim=IMG_DIM):
    """Deterministic init mirroring nn.Linear default (U(-1/sqrt(fan_in), +1/sqrt(fan_in)))."""
    k1, k2, k3, k4 = jax.random.split(key, 4)
    lim1 = 1.0 / jnp.sqrt(jnp.float32(z_dim))
    lim2 = 1.0 / jnp.sqrt(jnp.float32(hidden))
    w1 = jax.random.uniform(k1, (z_dim, hidden), jnp.float32, -lim1, lim1)
    b1 = jax.random.uniform(k2, (1, hidden), jnp.float32, -lim1, lim1)
    w2 = jax.random.uniform(k3, (hidden, img_dim), jnp.float32, -lim2, lim2)
    b2 = jax.random.uniform(k4, (1, img_dim), jnp.float32, -lim2, lim2)
    return w1, b1, w2, b2


def reference_forward_bf16(x, w1, b1, w2, b2):
    """Same numerics as the kernel (pre-store): bf16 matmul operands, f32 accumulation."""
    xc, w1c, w2c = (t.astype(jnp.bfloat16) for t in (x, w1, w2))
    h = jnp.dot(xc, w1c, preferred_element_type=jnp.float32) + b1
    h = jnp.where(h > 0, h, NEG_SLOPE * h)
    y = jnp.dot(h.astype(jnp.bfloat16), w2c, preferred_element_type=jnp.float32) + b2
    return jnp.tanh(y)


def reference_forward_f32(x, w1, b1, w2, b2):
    h = x @ w1 + b1
    h = jnp.where(h > 0, h, NEG_SLOPE * h)
    return jnp.tanh(h @ w2 + b2)


if __name__ == "__main__":
    key = jax.random.PRNGKey(0)
    kx, kp = jax.random.split(key)

    w1, b1, w2, b2 = init_params(kp)
    w1c, b1c, w2c, b2c = prepare_params(w1, b1, w2, b2)

    # --- small smoke test (bf16 output path, single grid step) --------------
    batch = 8
    x = jax.random.normal(kx, (batch, Z_DIM), jnp.float32)

    out = generator_forward(x, w1c, b1c, w2c, b2c)
    out = jax.block_until_ready(out)
    assert out.shape == (batch, IMG_DIM)
    assert out.dtype == jnp.bfloat16

    ref_bf16 = reference_forward_bf16(x, w1, b1, w2, b2)
    ref_f32 = reference_forward_f32(x, w1, b1, w2, b2)
    out_f32 = out.astype(jnp.float32)
    # bf16 store of tanh in [-1,1]: abs rounding error <= ~4e-3
    assert jnp.allclose(out_f32, ref_bf16, atol=1e-2, rtol=0.0), "mismatch vs bf16 reference"
    assert jnp.allclose(out_f32, ref_f32, atol=5e-2, rtol=5e-2), "mismatch vs f32 reference"

    # --- multi-step grid, odd batch, f32-output path -------------------------
    batch2 = 300  # not a multiple of 8 -> padded to 304/312 rows (not 512), then sliced
    x2 = jax.random.normal(jax.random.PRNGKey(1), (batch2, Z_DIM), jnp.float32)
    out2 = generator_forward(x2, w1c, b1c, w2c, b2c, block_b=128,
                             out_dtype=jnp.float32)
    out2 = jax.block_until_ready(out2)
    assert out2.shape == (batch2, IMG_DIM)
    assert out2.dtype == jnp.float32
    ref2 = reference_forward_bf16(x2, w1, b1, w2, b2)
    assert jnp.allclose(out2, ref2, atol=2e-3, rtol=2e-3), "mismatch vs bf16 reference (gridded)"

    print("KERNEL_OK")
</pallas_src>

<mosaic_0001>
module attributes {stable_mosaic.version = 11 : i64} {
  func.func @generator_kernel(%arg0: i32, %arg1: memref<8x64xbf16, #tpu.memory_space<vmem>>, %arg2: memref<64x256xbf16, #tpu.memory_space<vmem>>, %arg3: memref<1x256xf32, #tpu.memory_space<vmem>>, %arg4: memref<256x784xbf16, #tpu.memory_space<vmem>>, %arg5: memref<1x784xf32, #tpu.memory_space<vmem>>, %arg6: memref<8x784xbf16, #tpu.memory_space<vmem>>) attributes {dimension_semantics = [#tpu.dimension_semantics<parallel>], iteration_bounds = array<i64: 1>, scalar_prefetch = 0 : i64, scratch_operands = 0 : i64, tpu.core_type = #tpu.core_type<tc>, window_params = [{transform_indices = @transform_0, window_bounds = array<i64: 8, 64>}, {pipeline_mode = #tpu.pipeline_mode<synchronous>, transform_indices = @transform_1, window_bounds = array<i64: 64, 256>}, {pipeline_mode = #tpu.pipeline_mode<synchronous>, transform_indices = @transform_2, window_bounds = array<i64: 1, 256>}, {pipeline_mode = #tpu.pipeline_mode<synchronous>, transform_indices = @transform_3, window_bounds = array<i64: 256, 784>}, {pipeline_mode = #tpu.pipeline_mode<synchronous>, transform_indices = @transform_4, window_bounds = array<i64: 1, 784>}, {transform_indices = @transform_5, window_bounds = array<i64: 8, 784>}]} {
    %c0 = arith.constant 0 : index
    %c0_0 = arith.constant 0 : index
    %0 = vector.load %arg1[%c0, %c0_0] : memref<8x64xbf16, #tpu.memory_space<vmem>>, vector<8x64xbf16>
    %c0_1 = arith.constant 0 : index
    %c0_2 = arith.constant 0 : index
    %1 = vector.load %arg2[%c0_1, %c0_2] : memref<64x256xbf16, #tpu.memory_space<vmem>>, vector<64x256xbf16>
    %cst = arith.constant dense<0.000000e+00> : vector<8x256xf32>
    %2 = tpu.matmul %0, %1, %cst {dimension_numbers = #tpu.dot_dimension_numbers<[1], [0], [0], [1], [0, 0, 1, 1], [], []>} : vector<8x64xbf16>, vector<64x256xbf16>, vector<8x256xf32> -> vector<8x256xf32>
    %c0_3 = arith.constant 0 : index
    %c0_4 = arith.constant 0 : index
    %3 = vector.load %arg3[%c0_3, %c0_4] : memref<1x256xf32, #tpu.memory_space<vmem>>, vector<1x256xf32>
    %4 = vector.broadcast %3 : vector<1x256xf32> to vector<8x256xf32>
    %5 = arith.addf %2, %4 : vector<8x256xf32>
    %cst_5 = arith.constant 0.000000e+00 : f32
    %6 = vector.broadcast %cst_5 : f32 to vector<8x256xf32>
    %7 = arith.cmpf ogt, %5, %6 : vector<8x256xf32>
    %cst_6 = arith.constant 1.000000e-01 : f32
    %8 = vector.broadcast %cst_6 : f32 to vector<8x256xf32>
    %9 = arith.mulf %8, %5 : vector<8x256xf32>
    %10 = arith.select %7, %5, %9 : vector<8x256xi1>, vector<8x256xf32>
    %11 = arith.truncf %10 : vector<8x256xf32> to vector<8x256xbf16>
    %c0_7 = arith.constant 0 : index
    %c0_8 = arith.constant 0 : index
    %12 = vector.load %arg4[%c0_7, %c0_8] : memref<256x784xbf16, #tpu.memory_space<vmem>>, vector<256x784xbf16>
    %cst_9 = arith.constant dense<0.000000e+00> : vector<8x784xf32>
    %13 = tpu.matmul %11, %12, %cst_9 {dimension_numbers = #tpu.dot_dimension_numbers<[1], [0], [0], [1], [0, 0, 1, 1], [], []>} : vector<8x256xbf16>, vector<256x784xbf16>, vector<8x784xf32> -> vector<8x784xf32>
    %c0_10 = arith.constant 0 : index
    %c0_11 = arith.constant 0 : index
    %14 = vector.load %arg5[%c0_10, %c0_11] : memref<1x784xf32, #tpu.memory_space<vmem>>, vector<1x784xf32>
    %15 = vector.broadcast %14 : vector<1x784xf32> to vector<8x784xf32>
    %16 = arith.addf %13, %15 : vector<8x784xf32>
    %17 = math.tanh %16 : vector<8x784xf32>
    %18 = arith.truncf %17 : vector<8x784xf32> to vector<8x784xbf16>
    %c0_12 = arith.constant 0 : index
    %c0_13 = arith.constant 0 : index
    %19 = vector.load %arg6[%c0_12, %c0_13] : memref<8x784xbf16, #tpu.memory_space<vmem>>, vector<8x784xbf16>
    tpu.vector_store %arg6[%c0_12, %c0_13], %18 {strides = array<i32>} : memref<8x784xbf16, #tpu.memory_space<vmem>>, vector<8x784xbf16>,
    return
  }
  func.func @transform_0(%arg0: i32) -> (i32, i32) {
    %c0_i32 = arith.constant 0 : i32
    %c0_i32_0 = arith.constant 0 : i32
    return %arg0, %c0_i32 : i32, i32
  }
  func.func @transform_1(%arg0: i32) -> (i32, i32) {
    %c0_i32 = arith.constant 0 : i32
    %c0_i32_0 = arith.constant 0 : i32
    %c0_i32_1 = arith.constant 0 : i32
    return %c0_i32, %c0_i32_0 : i32, i32
  }
  func.func @transform_2(%arg0: i32) -> (i32, i32) {
    %c0_i32 = arith.constant 0 : i32
    %c0_i32_0 = arith.constant 0 : i32
    %c0_i32_1 = arith.constant 0 : i32
    return %c0_i32, %c0_i32_0 : i32, i32
  }
  func.func @transform_3(%arg0: i32) -> (i32, i32) {
    %c0_i32 = arith.constant 0 : i32
    %c0_i32_0 = arith.constant 0 : i32
    %c0_i32_1 = arith.constant 0 : i32
    return %c0_i32, %c0_i32_0 : i32, i32
  }
  func.func @transform_4(%arg0: i32) -> (i32, i32) {
    %c0_i32 = arith.constant 0 : i32
    %c0_i32_0 = arith.constant 0 : i32
    %c0_i32_1 = arith.constant 0 : i32
    return %c0_i32, %c0_i32_0 : i32, i32
  }
  func.func @transform_5(%arg0: i32) -> (i32, i32) {
    %c0_i32 = arith.constant 0 : i32
    %c0_i32_0 = arith.constant 0 : i32
    return %arg0, %c0_i32 : i32, i32
  }
}

</mosaic_0001>

<bundles_post_ra>
// kernel: generator_forward.1
= control target key start
LH: loop header
LB: loop body
LE: loop exit
PB: predicated region body
PF: predicated region fallthrough
CT: control target
= control target key end

     0   :  { %v1458_v2 = vmov 0   ;;  %vm83_vm0 = vcmask 523264   ;;  %s1894_s0 = inlined_call_operand.vmem [shape: bf16[8,64], index: 0, kind: input, shape index: {}]   ;;  %s1895_s1 = inlined_call_operand.vmem [shape: bf16[64,256], index: 1, kind: input, shape index: {}]   ;;  %s1896_s2 = inlined_call_operand.vmem [shape: f32[1,256], index: 2, kind: input, shape index: {}]   ;;  %s1897_s3 = inlined_call_operand.vmem [shape: bf16[256,784], index: 3, kind: input, shape index: {}]   ;;  %s1898_s4 = inlined_call_operand.vmem [shape: f32[1,784], index: 4, kind: input, shape index: {}]   ;;  %s1899_s5 = inlined_call_operand.hbm [shape: bf16[8,784], index: 5, kind: output, shape index: {}]  }
   0x1   :  { %v1248_v0 = vld [vmem:[%s1895_s1 + $0x4] ss:$8 sps:$4 sm:$0xff]   ;;  %v1250_v1 = vld [vmem:[%s1895_s1] ss:$8 sps:$4 sm:$0xff]   ;;  %119 = vmatprep.mubr.bf16.mxu0 %v1458_v2  ;;  %v1251_v3 = vld [vmem:[%s1895_s1 + $0x14] ss:$8 sps:$4 sm:$0xff]  }
   0x2   :  { %87 = vmatprep.subr.bf16.mxu0 %v1248_v0  ;;  %v1253_v4 = vld [vmem:[%s1895_s1 + $0x10] ss:$8 sps:$4 sm:$0xff]   ;;  %v1254_v5 = vld [vmem:[%s1895_s1 + $0x24] ss:$8 sps:$4 sm:$0xff]   ;;  %v1256_v7 = vld [vmem:[%s1895_s1 + $0x20] ss:$8 sps:$4 sm:$0xff]  }
   0x3   :  { %88 = vmatpush1.bf16.msra.mxu0 %v1250_v1  ;;  %v1260_v6 = vld [vmem:[%s1897_s3 + $0x4] ss:$28 sps:$4 sm:$0xff]   ;;  %v1257_v8 = vld [vmem:[%s1895_s1 + $0x34] ss:$8 sps:$4 sm:$0xff]   ;;  %v1259_v11 = vld [vmem:[%s1895_s1 + $0x30] ss:$8 sps:$4 sm:$0xff]  }
   0x4   :  { %89 = vmatprep.subr.bf16.mxu0 %v1251_v3  ;;  %877 = vmatprep.subr.bf16.mxu1 %v1260_v6  ;;  %v1265_v9 = vld [vmem:[%s1897_s3] ss:$28 sps:$4 sm:$0xff]   ;;  %v1271_v12 = vld [vmem:[%s1897_s3 + $0x38] ss:$28 sps:$4 sm:$0xff]   ;;  %v1264_v14 = vld [vmem:[%s1897_s3 + $0xc] ss:$28 sps:$4 sm:$0xff]  }
   0x5   :  { %v1266_v10 = vld [vmem:[%s1897_s3 + $0x3c] ss:$28 sps:$4 sm:$0xff]   ;;  %878 = vmatpush1.bf16.msra.mxu1 %v1265_v9  ;;  %v1272_v13 = vld [vmem:[%s1897_s3 + $0x74] ss:$28 sps:$4 sm:$0xff]   ;;  %v22_v15 = vld [vmem:[%s1894_s0] sm:$0xf] }
   0x6   :  { %879 = vmatprep.subr.bf16.mxu1 %v1266_v10  ;;  %v1277_v16 = vld [vmem:[%s1897_s3 + $0x70] ss:$28 sps:$4 sm:$0xff]   ;;  %v1262_v17 = vld [vmem:[%s1897_s3 + $0x8] ss:$28 sps:$4 sm:$0xff]   ;;  %v1268_v20 = vld [vmem:[%s1897_s3 + $0x40] ss:$28 sps:$4 sm:$0xff]  }
   0x7   :  { %90 = vmatpush1.bf16.msra.mxu0 %v1253_v4  ;;  %v1278_v18 = vld [vmem:[%s1897_s3 + $0xac] ss:$28 sps:$4 sm:$0xff]   ;;  %v1270_v19 = vld [vmem:[%s1897_s3 + $0x44] ss:$28 sps:$4 sm:$0xff]   ;;  %v1276_v23 = vld [vmem:[%s1897_s3 + $0x7c] ss:$28 sps:$4 sm:$0xff]  }
   0x8   :  { %91 = vmatprep.subr.bf16.mxu0 %v1254_v5  ;;  %v1283_v21 = vld [vmem:[%s1897_s3 + $0xa8] ss:$28 sps:$4 sm:$0xff]   ;;  %v1289_v24 = vld [vmem:[%s1897_s3 + $0xe0] ss:$28 sps:$4 sm:$0xff]   ;;  %v1274_v25 = vld [vmem:[%s1897_s3 + $0x78] ss:$28 sps:$4 sm:$0xff]  }
   0x9   :  { %880 = vmatpush1.bf16.msra.mxu1 %v1271_v12  ;;  %v1284_v22 = vld [vmem:[%s1897_s3 + $0xe4] ss:$28 sps:$4 sm:$0xff]   ;;  %v1290_v26 = vld [vmem:[%s1897_s3 + $0x11c] ss:$28 sps:$4 sm:$0xff]   ;;  %v1282_v27 = vld [vmem:[%s1897_s3 + $0xb4] ss:$28 sps:$4 sm:$0xff]  }
   0xa   :  { %881 = vmatprep.subr.bf16.mxu1 %v1272_v13  ;;  %v1280_v28 = vld [vmem:[%s1897_s3 + $0xb0] ss:$28 sps:$4 sm:$0xff]   ;;  %v1295_v29 = vld [vmem:[%s1897_s3 + $0x118] ss:$28 sps:$4 sm:$0xff]   ;;  %v1286_v33 = vld [vmem:[%s1897_s3 + $0xe8] ss:$28 sps:$4 sm:$0xff]  }
   0xb   :  { %92 = vmatpush1.bf16.msra.mxu0 %v1256_v7  ;;  %v1296_v30 = vld [vmem:[%s1897_s3 + $0x154] ss:$28 sps:$4 sm:$0xff]   ;;  %v1288_v31 = vld [vmem:[%s1897_s3 + $0xec] ss:$28 sps:$4 sm:$0xff]   ;;  %v1294_v35 = vld [vmem:[%s1897_s3 + $0x124] ss:$28 sps:$4 sm:$0xff]  }
   0xc   :  { %93 = vmatprep.subr.bf16.mxu0 %v1257_v8  ;;  %v1301_v32 = vld [vmem:[%s1897_s3 + $0x150] ss:$28 sps:$4 sm:$0xff]   ;;  %v1292_v36 = vld [vmem:[%s1897_s3 + $0x120] ss:$28 sps:$4 sm:$0xff]   ;;  %v1307_v37 = vld [vmem:[%s1897_s3 + $0x188] ss:$28 sps:$4 sm:$0xff]  }
   0xd   :  { %882 = vmatpush1.bf16.msra.mxu1 %v1277_v16  ;;  %v1302_v34 = vld [vmem:[%s1897_s3 + $0x18c] ss:$28 sps:$4 sm:$0xff]   ;;  %v1308_v38 = vld [vmem:[%s1897_s3 + $0x1c4] ss:$28 sps:$4 sm:$0xff]   ;;  %v1300_v39 = vld [vmem:[%s1897_s3 + $0x15c] ss:$28 sps:$4 sm:$0xff]  }
   0xe   :  { %883 = vmatprep.subr.bf16.mxu1 %v1278_v18  ;;  %v1313_v40 = vld [vmem:[%s1897_s3 + $0x1c0] ss:$28 sps:$4 sm:$0xff]   ;;  %v1298_v41 = vld [vmem:[%s1897_s3 + $0x158] ss:$28 sps:$4 sm:$0xff]   ;;  %v1304_v44 = vld [vmem:[%s1897_s3 + $0x190] ss:$28 sps:$4 sm:$0xff]  }
   0xf   :  { %94 = vmatpush1.bf16.msra.mxu0 %v1259_v11  ;;  %v1314_v42 = vld [vmem:[%s1897_s3 + $0x1fc] ss:$28 sps:$4 sm:$0xff]   ;;  %v1306_v43 = vld [vmem:[%s1897_s3 + $0x194] ss:$28 sps:$4 sm:$0xff]   ;;  %v1312_v45 = vld [vmem:[%s1897_s3 + $0x1cc] ss:$28 sps:$4 sm:$0xff]  }
  0x10   :  { %918 = vmatprep.subr.bf16.mxu0 %v1264_v14  ;;  %v1319_v46 = vld [vmem:[%s1897_s3 + $0x1f8] ss:$28 sps:$4 sm:$0xff]   ;;  %v1325_v48 = vld [vmem:[%s1897_s3 + $0x230] ss:$28 sps:$4 sm:$0xff]   ;;  %v1310_v49 = vld [vmem:[%s1897_s3 + $0x1c8] ss:$28 sps:$4 sm:$0xff]  }
  0x11   :  { %884 = vmatpush1.bf16.msra.mxu1 %v1283_v21  ;;  %v1320_v47 = vld [vmem:[%s1897_s3 + $0x234] ss:$28 sps:$4 sm:$0xff]   ;;  %v1326_v50 = vld [vmem:[%s1897_s3 + $0x26c] ss:$28 sps:$4 sm:$0xff]   ;;  %v1318_v51 = vld [vmem:[%s1897_s3 + $0x204] ss:$28 sps:$4 sm:$0xff]  }
  0x12   :  { %1103 = vmatmul.mubr.msk.bf16.vlgmr.msra.gmra.mrb[0].mxu0 %vm83_vm0, %v22_v15  ;;  %885 = vmatprep.subr.bf16.mxu1 %v1284_v22  ;;  %v1331_v52 = vld [vmem:[%s1897_s3 + $0x268] ss:$28 sps:$4 sm:$0xff]   ;;  %v1316_v53 = vld [vmem:[%s1897_s3 + $0x200] ss:$28 sps:$4 sm:$0xff]   ;;  %v1322_v57 = vld [vmem:[%s1897_s3 + $0x238] ss:$28 sps:$4 sm:$0xff]  }
  0x13   :  { %919 = vmatpush1.bf16.msra.mxu0 %v1262_v17  ;;  %v1332_v54 = vld [vmem:[%s1897_s3 + $0x2a4] ss:$28 sps:$4 sm:$0xff]   ;;  %v1324_v55 = vld [vmem:[%s1897_s3 + $0x23c] ss:$28 sps:$4 sm:$0xff]   ;;  %v1330_v59 = vld [vmem:[%s1897_s3 + $0x274] ss:$28 sps:$4 sm:$0xff]  }
  0x14   :  { %920 = vmatprep.subr.bf16.mxu0 %v1270_v19  ;;  %v1337_v56 = vld [vmem:[%s1897_s3 + $0x2a0] ss:$28 sps:$4 sm:$0xff]   ;;  %v1343_v60 = vld [vmem:[%s1897_s3 + $0x2d8] ss:$28 sps:$4 sm:$0xff]   ;;  %v1328_v61 = vld [vmem:[%s1897_s3 + $0x270] ss:$28 sps:$4 sm:$0xff]  }
  0x15   :  { %886 = vmatpush1.bf16.msra.mxu1 %v1289_v24  ;;  %v1338_v58 = vld [vmem:[%s1897_s3 + $0x2dc] ss:$28 sps:$4 sm:$0xff]   ;;  %v1336_v62 = vld [vmem:[%s1897_s3 + $0x2ac] ss:$28 sps:$4 sm:$0xff]   ;;  %v1342_v0 = vld [vmem:[%s1897_s3 + $0x2e4] ss:$28 sps:$4 sm:$0xff]  }
  0x16   :  { %887 = vmatprep.subr.bf16.mxu1 %v1290_v26  ;;  %v1334_v63 = vld [vmem:[%s1897_s3 + $0x2a8] ss:$28 sps:$4 sm:$0xff]   ;;  %v1340_v1 = vld [vmem:[%s1897_s3 + $0x2e0] ss:$28 sps:$4 sm:$0xff]  }
  0x17   :  { %921 = vmatpush1.bf16.msra.mxu0 %v1268_v20 }
  0x18   :  { %922 = vmatprep.subr.bf16.mxu0 %v1276_v23 }
  0x19   :  { %888 = vmatpush1.bf16.msra.mxu1 %v1295_v29 }
  0x1a   :  { %889 = vmatprep.subr.bf16.mxu1 %v1296_v30 }
  0x1b   :  { %923 = vmatpush1.bf16.msra.mxu0 %v1274_v25 }
  0x1c   :  { %924 = vmatprep.subr.bf16.mxu0 %v1282_v27 }
  0x1d   :  { %890 = vmatpush1.bf16.msra.mxu1 %v1301_v32 }
  0x1e   :  { %891 = vmatprep.subr.bf16.mxu1 %v1302_v34 }
  0x1f   :  { %925 = vmatpush1.bf16.msra.mxu0 %v1280_v28 }
  0x20   :  { %926 = vmatprep.subr.bf16.mxu0 %v1288_v31 }
  0x21   :  { %892 = vmatpush1.bf16.msra.mxu1 %v1307_v37 }
  0x22   :  { %893 = vmatprep.subr.bf16.mxu1 %v1308_v38 }
  0x23   :  { %927 = vmatpush1.bf16.msra.mxu0 %v1286_v33 }
  0x24   :  { %928 = vmatprep.subr.bf16.mxu0 %v1294_v35 }
  0x25   :  { %894 = vmatpush1.bf16.msra.mxu1 %v1313_v40 }
  0x26   :  { %895 = vmatprep.subr.bf16.mxu1 %v1314_v42 }
  0x27   :  { %929 = vmatpush1.bf16.msra.mxu0 %v1292_v36 }
  0x28   :  { %930 = vmatprep.subr.bf16.mxu0 %v1300_v39 }
  0x29   :  { %896 = vmatpush1.bf16.msra.mxu1 %v1319_v46 }
  0x2a   :  { %897 = vmatprep.subr.bf16.mxu1 %v1320_v47 }
  0x2b   :  { %931 = vmatpush1.bf16.msra.mxu0 %v1298_v41 }
  0x2c   :  { %932 = vmatprep.subr.bf16.mxu0 %v1306_v43 }
  0x2d   :  { %898 = vmatpush1.bf16.msra.mxu1 %v1325_v48 }
  0x2e   :  { %899 = vmatprep.subr.bf16.mxu1 %v1326_v50 }
  0x2f   :  { %933 = vmatpush1.bf16.msra.mxu0 %v1304_v44 }
  0x30   :  { %934 = vmatprep.subr.bf16.mxu0 %v1312_v45 }
  0x31   :  { %900 = vmatpush1.bf16.msra.mxu1 %v1331_v52 }
  0x32   :  { %901 = vmatprep.subr.bf16.mxu1 %v1332_v54 }
  0x33   :  { %935 = vmatpush1.bf16.msra.mxu0 %v1310_v49 }
  0x34   :  { %936 = vmatprep.subr.bf16.mxu0 %v1318_v51 }
  0x35   :  { %902 = vmatpush1.bf16.msra.mxu1 %v1337_v56 }
  0x36   :  { %903 = vmatprep.subr.bf16.mxu1 %v1338_v58 }
  0x37   :  { %937 = vmatpush1.bf16.msra.mxu0 %v1316_v53 }
  0x38   :  { %938 = vmatprep.subr.bf16.mxu0 %v1324_v55 }
  0x39   :  { %904 = vmatpush1.bf16.msra.mxu1 %v1343_v60 }
  0x3b   :  { %939 = vmatpush1.bf16.msra.mxu0 %v1322_v57 }
  0x3c   :  { %940 = vmatprep.subr.bf16.mxu0 %v1330_v59 }
  0x3f   :  { %941 = vmatpush1.bf16.msra.mxu0 %v1328_v61 }
  0x40   :  { %942 = vmatprep.subr.bf16.mxu0 %v1336_v62 }
  0x43   :  { %943 = vmatpush1.bf16.msra.mxu0 %v1334_v63 }
  0x44   :  { %10 = vsyncpa [#allocation3], 0  ;;  %944 = vmatprep.subr.bf16.mxu0 %v1342_v0  ;;  %v1344_v2 = vld [vmem:[%s1897_s3 + $0x314] ss:$28 sps:$4 sm:$0xff]   ;;  %v1348_v3 = vld [vmem:[%s1897_s3 + $0x31c] ss:$28 sps:$4 sm:$0xff]   ;;  %v33_v12 = vlaneseq }
  0x45   :  { %v1346_v4 = vld [vmem:[%s1897_s3 + $0x318] ss:$28 sps:$4 sm:$0xff]   ;;  %v1349_v5 = vld [vmem:[%s1897_s3 + $0x310] ss:$28 sps:$4 sm:$0xff]   ;;  %905 = vmatprep.subr.bf16.mxu1 %v1344_v2  ;;  %v1355_v9 = vld [vmem:[%s1897_s3 + $0x348] ss:$28 sps:$4 sm:$0xff]  }
  0x46   :  { %906 = vmatpush1.bf16.msra.mxu1 %v1349_v5  ;;  %v1350_v6 = vld [vmem:[%s1897_s3 + $0x34c] ss:$28 sps:$4 sm:$0xff]   ;;  %v1354_v7 = vld [vmem:[%s1897_s3 + $0x354] ss:$28 sps:$4 sm:$0xff]   ;;  %v1715_v13 = vshrl.u32 %v33_v12, 7  ;;  %vm1079_vm3 = vcmask 125952  }
  0x47   :  { %945 = vmatpush1.bf16.msra.mxu0 %v1340_v1  ;;  %v1352_v8 = vld [vmem:[%s1897_s3 + $0x350] ss:$28 sps:$4 sm:$0xff]   ;;  %907 = vmatprep.subr.bf16.mxu1 %v1350_v6  ;;  %v1359_v11 = vld [vmem:[%s1897_s3 + $0x1d8] ss:$28 sps:$4 sm:$0xff]   ;;  %v31_v15 = vld [vmem:[%s1896_s2] sm:$0x3] }
  0x48   :  { %946 = vmatprep.subr.bf16.mxu0 %v1348_v3  ;;  %v1358_v10 = vld [vmem:[%s1897_s3 + $0x14] ss:$28 sps:$4 sm:$0xff]   ;;  %v35_v14 = vsub.s32 0, %v1715_v13  ;;  %v39_v16 = vsub.s32 1, %v1715_v13  ;;  %v1363_v33 = vld [vmem:[%s1897_s3 + $0x4c] ss:$28 sps:$4 sm:$0xff]  }
  0x49   :  { %v1356_v30 = vld [vmem:[%s1897_s3 + $0x10] ss:$28 sps:$4 sm:$0xff]   ;;  %v1360_v31 = vld [vmem:[%s1897_s3 + $0x18] ss:$28 sps:$4 sm:$0xff]   ;;  %v1361_v35 = vld [vmem:[%s1897_s3 + $0x48] ss:$28 sps:$4 sm:$0xff]  }
  0x4a   :  { %908 = vmatpush1.bf16.msra.mxu1 %v1355_v9  ;;  %v36_v17 = vrot.slane %v31_v15, %v35_v14  ;;  %v40_v18 = vrot.slane %v31_v15, %v39_v16  ;;  %v1364_v34 = vld [vmem:[%s1897_s3 + $0x210] ss:$28 sps:$4 sm:$0xff]   ;;  %v1368_v37 = vld [vmem:[%s1897_s3 + $0x84] ss:$28 sps:$4 sm:$0xff]   ;;  %v1373_v41 = vld [vmem:[%s1897_s3 + $0xbc] ss:$28 sps:$4 sm:$0xff]  }
  0x4b   :  { %947 = vmatpush1.bf16.msra.mxu0 %v1346_v4  ;;  %959 = vmatprep.subr.bf16.mxu1 %v1358_v10  ;;  %v1365_v36 = vld [vmem:[%s1897_s3 + $0x50] ss:$28 sps:$4 sm:$0xff]   ;;  %v1369_v38 = vld [vmem:[%s1897_s3 + $0x248] ss:$28 sps:$4 sm:$0xff]   ;;  %v1366_v39 = vld [vmem:[%s1897_s3 + $0x80] ss:$28 sps:$4 sm:$0xff]  }
  0x4c   :  { %948 = vmatprep.subr.bf16.mxu0 %v1354_v7  ;;  %v1370_v40 = vld [vmem:[%s1897_s3 + $0x88] ss:$28 sps:$4 sm:$0xff]   ;;  %v1374_v42 = vld [vmem:[%s1897_s3 + $0x280] ss:$28 sps:$4 sm:$0xff]   ;;  %v1371_v43 = vld [vmem:[%s1897_s3 + $0xb8] ss:$28 sps:$4 sm:$0xff]  }
  0x4d   :  { %v1375_v44 = vld [vmem:[%s1897_s3 + $0xc0] ss:$28 sps:$4 sm:$0xff]   ;;  %v1378_v45 = vld [vmem:[%s1897_s3 + $0xf4] ss:$28 sps:$4 sm:$0xff]   ;;  %v1383_v49 = vld [vmem:[%s1897_s3 + $0x12c] ss:$28 sps:$4 sm:$0xff]  }
  0x4e   :  { %v1379_v46 = vld [vmem:[%s1897_s3 + $0x2b8] ss:$28 sps:$4 sm:$0xff]   ;;  %v1376_v47 = vld [vmem:[%s1897_s3 + $0xf0] ss:$28 sps:$4 sm:$0xff]   ;;  %v1381_v51 = vld [vmem:[%s1897_s3 + $0x128] ss:$28 sps:$4 sm:$0xff]  }
  0x4f   :  { %949 = vmatpush1.bf16.msra.mxu0 %v1352_v8  ;;  %v1380_v48 = vld [vmem:[%s1897_s3 + $0xf8] ss:$28 sps:$4 sm:$0xff]   ;;  %v1384_v50 = vld [vmem:[%s1897_s3 + $0x2f0] ss:$28 sps:$4 sm:$0xff]   ;;  %v1388_v53 = vld [vmem:[%s1897_s3 + $0x164] ss:$28 sps:$4 sm:$0xff]  }
  0x50   :  { %1224 = vmatprep.subr.bf16.mxu0 %v1359_v11  ;;  %v1385_v52 = vld [vmem:[%s1897_s3 + $0x130] ss:$28 sps:$4 sm:$0xff]   ;;  %v1389_v54 = vld [vmem:[%s1897_s3 + $0x328] ss:$28 sps:$4 sm:$0xff]   ;;  %v1386_v55 = vld [vmem:[%s1897_s3 + $0x160] ss:$28 sps:$4 sm:$0xff]  }
  0x51   :  { %v1390_v56 = vld [vmem:[%s1897_s3 + $0x168] ss:$28 sps:$4 sm:$0xff]   ;;  %v1393_v57 = vld [vmem:[%s1897_s3 + $0x19c] ss:$28 sps:$4 sm:$0xff]   ;;  %v1398_v61 = vld [vmem:[%s1897_s3 + $0x1d4] ss:$28 sps:$4 sm:$0xff]  }
  0x52   :  { %v1394_v58 = vld [vmem:[%s1897_s3 + $0x360] ss:$28 sps:$4 sm:$0xff]   ;;  %v1391_v59 = vld [vmem:[%s1897_s3 + $0x198] ss:$28 sps:$4 sm:$0xff]   ;;  %v1396_v62 = vld [vmem:[%s1897_s3 + $0x1d0] ss:$28 sps:$4 sm:$0xff]  }
  0x53   :  { %v1395_v60 = vld [vmem:[%s1897_s3 + $0x1a0] ss:$28 sps:$4 sm:$0xff]   ;;  %v1401_v63 = vld [vmem:[%s1897_s3 + $0x20c] ss:$28 sps:$4 sm:$0xff]   ;;  %v1405_v4 = vld [vmem:[%s1897_s3 + $0x278] ss:$28 sps:$4 sm:$0xff]  }
  0x54   :  { %v1399_v0 = vld [vmem:[%s1897_s3 + $0x208] ss:$28 sps:$4 sm:$0xff]   ;;  %v1402_v2 = vld [vmem:[%s1897_s3 + $0x240] ss:$28 sps:$4 sm:$0xff]   ;;  %v1410_v5 = vld [vmem:[%s1897_s3 + $0x2b4] ss:$28 sps:$4 sm:$0xff]  }
  0x55   :  { %v1404_v1 = vld [vmem:[%s1897_s3 + $0x244] ss:$28 sps:$4 sm:$0xff]   ;;  %v1407_v3 = vld [vmem:[%s1897_s3 + $0x27c] ss:$28 sps:$4 sm:$0xff]   ;;  %v1408_v6 = vld [vmem:[%s1897_s3 + $0x2b0] ss:$28 sps:$4 sm:$0xff]  }
  0x56   :  { %v1413_v7 = vld [vmem:[%s1897_s3 + $0x2ec] ss:$28 sps:$4 sm:$0xff]   ;;  %v1416_v9 = vld [vmem:[%s1897_s3 + $0x324] ss:$28 sps:$4 sm:$0xff]   ;;  %v1419_v11 = vld [vmem:[%s1897_s3 + $0x35c] ss:$28 sps:$4 sm:$0xff]  }
  0x57   :  { %v1411_v8 = vld [vmem:[%s1897_s3 + $0x2e8] ss:$28 sps:$4 sm:$0xff]   ;;  %v1414_v10 = vld [vmem:[%s1897_s3 + $0x320] ss:$28 sps:$4 sm:$0xff]   ;;  %v1417_v12 = vld [vmem:[%s1897_s3 + $0x358] ss:$28 sps:$4 sm:$0xff]  }
  0x58   :  { %v276_v15 = vsub.s32 2, %v1715_v13  ;;  %s1459_s3 = smov [#allocation2]  }
  0xe5   :  { %v121_v19 = vpop.f32.mrb[0].mxu0 }
  0xe6   :  { %v122_v20 = vadd.f32 %v121_v19, %v36_v17  ;;  %v123_v21 = vpop.f32.mrb[1].mxu0  ;;  %v264_v17 = vld [vmem:[%s1898_s4] sm:$0x7f]  ;;  %s1087_s4 = sshll.u32 %s1459_s3, 4  ;;  %s1088_s4 = int_to_ptr.vmem [resolvable:$true] %s1087_s4 }
  0xe7   :  { %v124_v22 = vadd.f32 %v123_v21, %v40_v18  ;;  %v125_v23 = vpop.f32.mrb[2].mxu0  ;;  %v280_v18 = vsub.s32 3, %v1715_v13  ;;  %v269_v19 = vrot.slane %v264_v17, %v35_v14  ;;  %v273_v21 = vrot.slane %v264_v17, %v39_v16  ;;  %s1434_s19 = scalar_lea.vmem %s1088_s4, 448  ;;  %p1439_p1 = scmp.lt.s32.totalorder %s1088_s4, %s1088_s4 }
  0xe8   :  { %vm128_vm1 = vcmp.gt.f32.partialorder %v122_v20, 0.0  ;;  %v130_v24 = vmul.f32 0.1, %v122_v20  ;;  %v126_v25 = vpop.f32.mrb[3].mxu0  ;;  %p1435_p0 = scmp.ne.s32.totalorder %s1088_s4, %s1434_s19  ;;  %p1440_p2 = scmp.lt.s32.totalorder %s1434_s19, %s1434_s19 }
  0xe9   :  { %vm129_vm2 = vcmp.gt.f32.partialorder %v124_v22, 0.0  ;;  %v131_v26 = vmul.f32 0.1, %v124_v22 }
  0xea   :  { %v132_v27 = vsel %vm128_vm1, %v122_v20, %v130_v24  ;;  %v277_v20 = vrot.slane %v264_v17, %v276_v15  ;;  %p1441_p3 = por %p1440_p2, %p1439_p1 }
  0xeb   :  { %v133_v28 = vsel %vm129_vm2, %v124_v22, %v131_v26  ;;  %v1732_v32 = vpack.c.bf16 %v132_v27, %v132_v27  ;;  %v281_v22 = vrot.slane %v264_v17, %v280_v18 }
  0xec   :  { %v135_v29 = vpack.c.bf16 %v133_v28, %v133_v28  ;;  %p1442_p4 = pnand %p1441_p3, %p1435_p0 }
  0xee   :  { %909 = vmatprep.mubr.bf16.mxu1 %v135_v29  ;;  %950 = vmatprep.mubr.bf16.mxu0 %v135_v29 }
  0xef   :  { %910 = vmatmul.mubr.bf16.vlgmr.msra.gmra.mrb[0].mxu1 %v1732_v32  ;;  %951 = vmatmul.mubr.bf16.vlgmr.msra.gmra.mrb[4].mxu0 %v1732_v32 }
  0xf0   :  { %960 = vmatpush1.bf16.msra.mxu1 %v1356_v30  ;;  %1225 = vmatpush3.bf16.msra.mxu0 %v1360_v31 }
  0xf1   :  { %991 = vmatprep.mubr.bf16.mxu1 %v135_v29  ;;  %1032 = vmatprep.mubr.bf16.mxu0 %v135_v29 }
  0xf2   :  { %961 = vmatprep.subr.bf16.mxu1 %v1363_v33  ;;  %1226 = vmatprep.subr.bf16.mxu0 %v1364_v34 }
  0xf4   :  { %962 = vmatpush1.bf16.msra.mxu1 %v1361_v35  ;;  %1227 = vmatpush3.bf16.msra.mxu0 %v1365_v36 }
  0xf5   :  { %963 = vmatprep.subr.bf16.mxu1 %v1368_v37  ;;  %1228 = vmatprep.subr.bf16.mxu0 %v1369_v38 }
  0xf8   :  { %964 = vmatpush1.bf16.msra.mxu1 %v1366_v39  ;;  %1229 = vmatpush3.bf16.msra.mxu0 %v1370_v40  ;;  %v292_v39 = vsub.s32 6, %v1715_v13 }
  0xf9   :  { %965 = vmatprep.subr.bf16.mxu1 %v1373_v41  ;;  %1230 = vmatprep.subr.bf16.mxu0 %v1374_v42 }
  0xfa   :  { %v293_v41 = vrot.slane %v264_v17, %v292_v39 }
  0xfc   :  { %966 = vmatpush1.bf16.msra.mxu1 %v1371_v43  ;;  %1231 = vmatpush3.bf16.msra.mxu0 %v1375_v44 }
  0xfd   :  { %967 = vmatprep.subr.bf16.mxu1 %v1378_v45  ;;  %1232 = vmatprep.subr.bf16.mxu0 %v1379_v46 }
 0x100   :  { %968 = vmatpush1.bf16.msra.mxu1 %v1376_v47  ;;  %1233 = vmatpush3.bf16.msra.mxu0 %v1380_v48 }
 0x101   :  { %969 = vmatprep.subr.bf16.mxu1 %v1383_v49  ;;  %1234 = vmatprep.subr.bf16.mxu0 %v1384_v50  ;;  %v284_v49 = vsub.s32 4, %v1715_v13  ;;  %v288_v50 = vsub.s32 5, %v1715_v13 }
 0x104   :  { %970 = vmatpush1.bf16.msra.mxu1 %v1381_v51  ;;  %1235 = vmatpush3.bf16.msra.mxu0 %v1385_v52  ;;  %v285_v51 = vrot.slane %v264_v17, %v284_v49  ;;  %v289_v52 = vrot.slane %v264_v17, %v288_v50 }
 0x105   :  { %971 = vmatprep.subr.bf16.mxu1 %v1388_v53  ;;  %1236 = vmatprep.subr.bf16.mxu0 %v1389_v54 }
 0x108   :  { %972 = vmatpush1.bf16.msra.mxu1 %v1386_v55  ;;  %1237 = vmatpush3.bf16.msra.mxu0 %v1390_v56 }
 0x109   :  { %973 = vmatprep.subr.bf16.mxu1 %v1393_v57  ;;  %1238 = vmatprep.subr.bf16.mxu0 %v1394_v58 }
 0x10c   :  { %974 = vmatpush1.bf16.msra.mxu1 %v1391_v59  ;;  %1239 = vmatpush3.bf16.msra.mxu0 %v1395_v60 }
 0x10d   :  { %975 = vmatprep.subr.bf16.mxu1 %v1398_v61 }
 0x10f   :  { %1033 = vmatmul.mubr.bf16.vlgmr.msra.gmra.mrb[8].mxu0 %v1732_v32 }
 0x110   :  { %976 = vmatpush1.bf16.msra.mxu1 %v1396_v62 }
 0x111   :  { %977 = vmatprep.subr.bf16.mxu1 %v1401_v63 }
 0x114   :  { %978 = vmatpush1.bf16.msra.mxu1 %v1399_v0 }
 0x115   :  { %979 = vmatprep.subr.bf16.mxu1 %v1404_v1 }
 0x118   :  { %980 = vmatpush1.bf16.msra.mxu1 %v1402_v2 }
 0x119   :  { %981 = vmatprep.subr.bf16.mxu1 %v1407_v3 }
 0x11c   :  { %982 = vmatpush1.bf16.msra.mxu1 %v1405_v4 }
 0x11d   :  { %983 = vmatprep.subr.bf16.mxu1 %v1410_v5 }
 0x120   :  { %984 = vmatpush1.bf16.msra.mxu1 %v1408_v6 }
 0x121   :  { %985 = vmatprep.subr.bf16.mxu1 %v1413_v7 }
 0x124   :  { %986 = vmatpush1.bf16.msra.mxu1 %v1411_v8 }
 0x125   :  { %987 = vmatprep.subr.bf16.mxu1 %v1416_v9 }
 0x128   :  { %988 = vmatpush1.bf16.msra.mxu1 %v1414_v10 }
 0x129   :  { %989 = vmatprep.subr.bf16.mxu1 %v1419_v11 }
 0x12c   :  { %990 = vmatpush1.bf16.msra.mxu1 %v1417_v12 }
 0x12f   :  { %992 = vmatmul.mubr.bf16.vlgmr.msra.gmra.mrb[4].mxu1 %v1732_v32 }
 0x1c2   :  { %v911_v23 = vpop.f32.mrb[0].mxu1  ;;  %v952_v24 = vpop.f32.mrb[4].mxu0 }
 0x1c3   :  { %v912_v25 = vadd.f32 %v911_v23, %v269_v19  ;;  %v953_v26 = vadd.f32 %v952_v24, %v277_v20  ;;  %v913_v27 = vpop.f32.mrb[1].mxu1  ;;  %v954_v28 = vpop.f32.mrb[5].mxu0 }
 0x1c4   :  { %v914_v29 = vadd.f32 %v913_v27, %v273_v21  ;;  %v955_v30 = vadd.f32 %v954_v28, %v281_v22  ;;  %v915_v31 = vpop.f32.mrb[2].mxu1  ;;  %v956_v32 = vpop.f32.mrb[6].mxu0 }
 0x1c5   :  { %1420 = vtanh.f32 %v912_v25  ;;  %v916_v33 = vpop.f32.mrb[3].mxu1  ;;  %v957_v34 = vpop.f32.mrb[7].mxu0 }
 0x1c6   :  { %1422 = vtanh.f32 %v953_v26 }
 0x1c7   :  { %1424 = vtanh.f32 %v914_v29 }
 0x1c8   :  { %1426 = vtanh.f32 %v955_v30 }
 0x1cf   :  { %v1421_v14 = vpop.eup %1420 }
 0x1d0   :  { %v1423_v35 = vpop.eup %1422 }
 0x1d1   :  { %v1425_v16 = vpop.eup %1424 }
 0x1d2   :  { %v1427_v36 = vpop.eup %1426  ;;  %v1220_v37 = vpack.c.bf16 %v1425_v16, %v1421_v14 }
 0x1d3   :  { %v1221_v38 = vpack.c.bf16 %v1427_v36, %v1423_v35 }
 0x1d4   :  { %1076 = vst [vmem:[#allocation2] sm:$0xff] %v1220_v37 }
 0x1d5   :  { %1077 = vst [vmem:[#allocation2 + $0x8] sm:$0xff] %v1221_v38 }
 0x1e2   :  { %v1240_v40 = vpop.f32.mrb[8].mxu0 }
 0x1e3   :  { %v1241_v42 = vpop.f32.mrb[9].mxu0 }
 0x1e4   :  { %v1242_v43 = vadd.f32 %v1241_v42, %v1240_v40  ;;  %v1243_v44 = vpop.f32.mrb[10].mxu0 }
 0x1e5   :  { %v1244_v45 = vpop.f32.mrb[11].mxu0 }
 0x1e6   :  { %v1035_v46 = vadd.f32 %v1242_v43, %v293_v41 }
 0x1e8   :  { %1428 = vtanh.f32 %v1035_v46 }
 0x1f2   :  { %v1429_v47 = vpop.eup %1428 }
 0x1f3   :  { %v1223_v48 = vpack.c.bf16 %v1429_v47, %v1429_v47 }
 0x1f5   :  { %1080 = vst.msk [vmem:[#allocation2 + $0x18] sm:$0xf] %vm1079_vm3, %v1223_v48 }
 0x202   :  { %v993_v53 = vpop.f32.mrb[4].mxu1 }
 0x203   :  { %v994_v54 = vadd.f32 %v993_v53, %v285_v51  ;;  %v995_v55 = vpop.f32.mrb[5].mxu1 }
 0x204   :  { %v996_v56 = vadd.f32 %v995_v55, %v289_v52  ;;  %v997_v57 = vpop.f32.mrb[6].mxu1 }
 0x205   :  { %1430 = vtanh.f32 %v994_v54  ;;  %v998_v58 = vpop.f32.mrb[7].mxu1 }
 0x206   :  { %1432 = vtanh.f32 %v996_v56 }
 0x20f   :  { %v1431_v59 = vpop.eup %1430 }
 0x210   :  { %v1433_v60 = vpop.eup %1432 }
 0x211   :  { %v1222_v61 = vpack.c.bf16 %v1433_v60, %v1431_v59 }
 0x213   :  { %1078 = vst [vmem:[#allocation2 + $0x10] sm:$0xff] %v1222_v61 }
 0x214   :  { %1445 = shalt.err (!%p1442_p4)
}
 0x215   :  { %s1446_s22 = scalar_lea.hbm %s1899_s5, 448 }
 0x216   :  { %p1447_p5 = scmp.ne.s32.totalorder %s1899_s5, %s1446_s22  ;;  %p1450_p6 = scmp.lt.u32.totalorder %s1446_s22, %s1899_s5 }
 0x218   :  { %p1452_p7 = pnand %p1450_p6, %p1447_p5 }
 0x21a   :  { %1455 = shalt.err (!%p1452_p7)
}
 0x21b   :  { %1090 = dma.vmem_to_hbm [thread:$0]  %s1088_s4, 448, %s1899_s5, [#allocation3]  }
 0x21c   :  { %1456 = dma.done.wait [#allocation3], 448  }
 0x21d   :  { %1457 = vsyncadd [#allocation3], 4294966848 }
 0x21e   :  { %1094 = vsyncpa [#allocation3], 1 }

</bundles_post_ra>
